<compile_context>
chip_gen: v7x
topology: tpu7x:2x2x1
jax: 0.10.0
libtpu: 0.0.40
codegen_flags: <defaults>
</compile_context>

<pallas_src>
import functools

import jax
import jax.numpy as jnp
from jax.experimental import pallas as pl
from jax.experimental.pallas import tpu as pltpu


# ---------------------------------------------------------------------------
# Kernels.  pos_ref: (ndim, ne, TB)   eye_ref: (ne, ne)   [TB on lanes]
# ---------------------------------------------------------------------------
def _dist_kernel(pos_ref, eye_ref, out_ref, *, ndim):
    dist2 = None
    for d in range(ndim):                              # static unroll
        xd = pos_ref[d]                                # (ne, TB)
        dd = xd[:, None, :] - xd[None, :, :]           # (ne, ne, TB), sublane bcast
        dist2 = dd * dd if dist2 is None else dist2 + dd * dd
    eps_eye = eye_ref[...][:, :, None]                 # (ne, ne, 1)
    out_ref[...] = jnp.sqrt(dist2 + eps_eye)


def _der1_kernel(pos_ref, eye_ref, out_ref, *, ndim):
    dist2 = None
    for d in range(ndim):
        xd = pos_ref[d]
        dd = xd[:, None, :] - xd[None, :, :]
        out_ref[d] = dd                                # stash diff plane in VMEM
        dist2 = dd * dd if dist2 is None else dist2 + dd * dd
    eps_eye = eye_ref[...][:, :, None]
    # Off-diagonal identical to 1/(sqrt(dist2) + 0); the diagonal differs from
    # the torch formula but multiplies an exactly-zero diff plane.
    invr = jax.lax.rsqrt(dist2 + eps_eye)              # EUP
    for d in range(ndim):
        out_ref[d] = out_ref[d] * invr                 # in-place second pass


def _der2_kernel(pos_ref, eye_ref, out_ref, *, ndim):
    dist2 = None
    for d in range(ndim):
        xd = pos_ref[d]
        dd = xd[:, None, :] - xd[None, :, :]
        dd2 = dd * dd
        out_ref[d] = dd2                               # stash diff^2 plane
        dist2 = dd2 if dist2 is None else dist2 + dd2
    eps_eye = eye_ref[...][:, :, None]
    invr = jax.lax.rsqrt(dist2 + eps_eye)              # EUP
    invr3 = invr * invr * invr
    for d in range(ndim):
        # sum_{a != d} diff_a^2 == dist2 - diff_d^2   (ndim == 3 indexing trick)
        out_ref[d] = (dist2 - out_ref[d]) * invr3


# ---------------------------------------------------------------------------
# Wrapper: lane-dense batch-tiled dispatch
# ---------------------------------------------------------------------------
def _round_down_multiple(x, m):
    return (x // m) * m


def _pick_batch_tile(nb, ne, ndim, derivative, budget_bytes=20 << 20):
    """Lane-dense batch tile: multiple of 128, or the full batch when small."""
    out_planes = 1 if derivative == 0 else ndim
    # Resident-set estimate per batch element: double-buffered in/out blocks
    # plus ~2 (ne, ne) f32 intermediates (dist2, invr).  Conservative for all
    # of v5e / v6e / v7x (stays well under the 32 MiB scoped VMEM limit).
    per_b = (2 * (ndim * ne + out_planes * ne * ne) + 2 * ne * ne) * 4
    tb = max(1, budget_bytes // per_b)
    if nb >= 256:
        # Keep >= 2 grid steps so dimension_semantics=('parallel',) can shard
        # the batch axis over v7x's two TensorCores.
        tb = min(tb, max(128, _round_down_multiple(nb // 2, 128)))
    if tb >= nb:
        return nb                                      # full extent: layout-legal
    return max(128, _round_down_multiple(tb, 128))


def electron_electron_distance(inp, nelec, ndim=3, derivative=0, eps=None):
    """inp: (Nbatch, Nelec*Ndim) -> distance (or derivative) matrices."""
    pos = inp.reshape(-1, nelec, ndim)
    dtype = pos.dtype
    if eps is None:
        eps = 1e-16 if dtype == jnp.float64 else 1e-6

    # batch-on-lanes layout: (ndim, nelec, nb)
    pos_t = jnp.transpose(pos, (2, 1, 0))
    nb = pos_t.shape[-1]
    eps_eye = eps * jnp.eye(nelec, dtype=dtype)        # built once, streamed in

    tb = _pick_batch_tile(nb, nelec, ndim, derivative)
    grid = (pl.cdiv(nb, tb),)

    pos_spec = pl.BlockSpec((ndim, nelec, tb), lambda b: (0, 0, b))
    eye_spec = pl.BlockSpec((nelec, nelec), lambda b: (0, 0))
    cparams = pltpu.CompilerParams(
        dimension_semantics=("parallel",),
        vmem_limit_bytes=32 * 1024 * 1024,
    )

    if derivative == 0:
        out = pl.pallas_call(
            functools.partial(_dist_kernel, ndim=ndim),
            out_shape=jax.ShapeDtypeStruct((nelec, nelec, nb), dtype),
            grid_spec=pl.GridSpec(
                grid=grid,
                in_specs=[pos_spec, eye_spec],
                out_specs=pl.BlockSpec((nelec, nelec, tb), lambda b: (0, 0, b)),
            ),
            compiler_params=cparams,
        )(pos_t, eps_eye)
        return jnp.transpose(out, (2, 0, 1))           # (nb, ne, ne)

    if derivative not in (1, 2):
        raise ValueError("derivative must be 0, 1 or 2")
    if derivative == 2 and ndim != 3:
        raise ValueError("second derivative indexing assumes ndim == 3")

    kernel = _der1_kernel if derivative == 1 else _der2_kernel
    out = pl.pallas_call(
        functools.partial(kernel, ndim=ndim),
        out_shape=jax.ShapeDtypeStruct((ndim, nelec, nelec, nb), dtype),
        grid_spec=pl.GridSpec(
            grid=grid,
            in_specs=[pos_spec, eye_spec],
            out_specs=pl.BlockSpec((ndim, nelec, nelec, tb),
                                   lambda b: (0, 0, 0, b)),
        ),
        compiler_params=cparams,
    )(pos_t, eps_eye)
    return jnp.transpose(out, (3, 0, 1, 2))            # (nb, ndim, ne, ne)


# ---------------------------------------------------------------------------
# Pure-JAX reference (mirrors the PyTorch module line-by-line)
# ---------------------------------------------------------------------------
def _ref_forward(inp, nelec, ndim=3, derivative=0, eps=1e-6):
    pos = inp.reshape(-1, nelec, ndim)
    norm = jnp.sum(pos ** 2, axis=-1)[..., None]
    dist2 = norm + jnp.swapaxes(norm, 1, 2) - 2.0 * jnp.einsum("bid,bjd->bij", pos, pos)
    eye = jnp.eye(nelec, dtype=pos.dtype)
    diag = jnp.einsum("bii->bi", dist2)[:, :, None] * eye
    dist = jnp.sqrt(dist2 - diag + eps * eye)
    if derivative == 0:
        return dist
    invr = 1.0 / (dist + eps * eye)
    posT = jnp.swapaxes(pos, 1, 2)                     # (b, ndim, nelec)
    diff = posT[:, :, :, None] - posT[:, :, None, :]   # (b, ndim, nelec, nelec)
    if derivative == 1:
        return diff * invr[:, None]
    invr3 = 1.0 / (dist ** 3 + eps * eye)
    diff2 = diff ** 2
    idx = jnp.array([[1, 2], [2, 0], [0, 1]])
    summed = diff2[:, idx].sum(2)
    return summed * invr3[:, None]


if __name__ == "__main__":
    key = jax.random.PRNGKey(0)
    ok = True
    # (multi-block lane-dense, ragged last block, tiny full-extent batch)
    for (nbatch, nelec, ndim) in ((256, 8, 3), (300, 10, 3), (4, 6, 3)):
        key, sub = jax.random.split(key)
        x = jax.random.normal(sub, (nbatch, nelec * ndim), dtype=jnp.float32)
        for deriv in (0, 1, 2):
            out = jax.block_until_ready(
                electron_electron_distance(x, nelec, ndim, derivative=deriv)
            )
            ref = _ref_forward(x, nelec, ndim, derivative=deriv)
            if out.shape != ref.shape or not bool(
                jnp.allclose(out, ref, atol=1e-4, rtol=1e-4)
            ):
                ok = False
                print(f"mismatch nbatch={nbatch} nelec={nelec} derivative={deriv}")

    if ok:
        print("KERNEL_OK")
</pallas_src>

<mosaic_0001>
module attributes {stable_mosaic.version = 11 : i64} {
  func.func @_dist_kernel(%arg0: i32, %arg1: memref<3x8x128xf32, #tpu.memory_space<vmem>>, %arg2: memref<8x8xf32, #tpu.memory_space<vmem>>, %arg3: memref<8x8x128xf32, #tpu.memory_space<vmem>>) attributes {dimension_semantics = [#tpu.dimension_semantics<parallel>], iteration_bounds = array<i64: 2>, scalar_prefetch = 0 : i64, scratch_operands = 0 : i64, tpu.core_type = #tpu.core_type<tc>, window_params = [{transform_indices = @transform_0, window_bounds = array<i64: 3, 8, 128>}, {pipeline_mode = #tpu.pipeline_mode<synchronous>, transform_indices = @transform_1, window_bounds = array<i64: 8, 8>}, {transform_indices = @transform_2, window_bounds = array<i64: 8, 8, 128>}]} {
    %c0 = arith.constant 0 : index
    %c0_0 = arith.constant 0 : index
    %c0_1 = arith.constant 0 : index
    %0 = vector.load %arg1[%c0, %c0_0, %c0_1] : memref<3x8x128xf32, #tpu.memory_space<vmem>>, vector<1x8x128xf32>
    %1 = vector.shape_cast %0 : vector<1x8x128xf32> to vector<8x128xf32>
    %2 = vector.shape_cast %1 : vector<8x128xf32> to vector<8x1x128xf32>
    %3 = vector.shape_cast %1 : vector<8x128xf32> to vector<1x8x128xf32>
    %4 = vector.broadcast %2 : vector<8x1x128xf32> to vector<8x8x128xf32>
    %5 = vector.broadcast %3 : vector<1x8x128xf32> to vector<8x8x128xf32>
    %6 = arith.subf %4, %5 : vector<8x8x128xf32>
    %7 = arith.mulf %6, %6 : vector<8x8x128xf32>
    %c1 = arith.constant 1 : index
    %c0_2 = arith.constant 0 : index
    %c0_3 = arith.constant 0 : index
    %8 = vector.load %arg1[%c1, %c0_2, %c0_3] : memref<3x8x128xf32, #tpu.memory_space<vmem>>, vector<1x8x128xf32>
    %9 = vector.shape_cast %8 : vector<1x8x128xf32> to vector<8x128xf32>
    %10 = vector.shape_cast %9 : vector<8x128xf32> to vector<8x1x128xf32>
    %11 = vector.shape_cast %9 : vector<8x128xf32> to vector<1x8x128xf32>
    %12 = vector.broadcast %10 : vector<8x1x128xf32> to vector<8x8x128xf32>
    %13 = vector.broadcast %11 : vector<1x8x128xf32> to vector<8x8x128xf32>
    %14 = arith.subf %12, %13 : vector<8x8x128xf32>
    %15 = arith.mulf %14, %14 : vector<8x8x128xf32>
    %16 = arith.addf %7, %15 : vector<8x8x128xf32>
    %c2 = arith.constant 2 : index
    %c0_4 = arith.constant 0 : index
    %c0_5 = arith.constant 0 : index
    %17 = vector.load %arg1[%c2, %c0_4, %c0_5] : memref<3x8x128xf32, #tpu.memory_space<vmem>>, vector<1x8x128xf32>
    %18 = vector.shape_cast %17 : vector<1x8x128xf32> to vector<8x128xf32>
    %19 = vector.shape_cast %18 : vector<8x128xf32> to vector<8x1x128xf32>
    %20 = vector.shape_cast %18 : vector<8x128xf32> to vector<1x8x128xf32>
    %21 = vector.broadcast %19 : vector<8x1x128xf32> to vector<8x8x128xf32>
    %22 = vector.broadcast %20 : vector<1x8x128xf32> to vector<8x8x128xf32>
    %23 = arith.subf %21, %22 : vector<8x8x128xf32>
    %24 = arith.mulf %23, %23 : vector<8x8x128xf32>
    %25 = arith.addf %16, %24 : vector<8x8x128xf32>
    %c0_6 = arith.constant 0 : index
    %c0_7 = arith.constant 0 : index
    %26 = vector.load %arg2[%c0_6, %c0_7] : memref<8x8xf32, #tpu.memory_space<vmem>>, vector<8x8xf32>
    %27 = vector.shape_cast %26 : vector<8x8xf32> to vector<8x8x1xf32>
    %28 = vector.broadcast %27 : vector<8x8x1xf32> to vector<8x8x128xf32>
    %29 = arith.addf %25, %28 : vector<8x8x128xf32>
    %30 = math.sqrt %29 : vector<8x8x128xf32>
    %c0_8 = arith.constant 0 : index
    %c0_9 = arith.constant 0 : index
    %c0_10 = arith.constant 0 : index
    %31 = vector.load %arg3[%c0_8, %c0_9, %c0_10] : memref<8x8x128xf32, #tpu.memory_space<vmem>>, vector<8x8x128xf32>
    tpu.vector_store %arg3[%c0_8, %c0_9, %c0_10], %30 {strides = array<i32>} : memref<8x8x128xf32, #tpu.memory_space<vmem>>, vector<8x8x128xf32>,
    return
  }
  func.func @transform_0(%arg0: i32) -> (i32, i32, i32) {
    %c0_i32 = arith.constant 0 : i32
    %c0_i32_0 = arith.constant 0 : i32
    %c0_i32_1 = arith.constant 0 : i32
    return %c0_i32, %c0_i32_0, %arg0 : i32, i32, i32
  }
  func.func @transform_1(%arg0: i32) -> (i32, i32) {
    %c0_i32 = arith.constant 0 : i32
    %c0_i32_0 = arith.constant 0 : i32
    %c0_i32_1 = arith.constant 0 : i32
    return %c0_i32, %c0_i32_0 : i32, i32
  }
  func.func @transform_2(%arg0: i32) -> (i32, i32, i32) {
    %c0_i32 = arith.constant 0 : i32
    %c0_i32_0 = arith.constant 0 : i32
    %c0_i32_1 = arith.constant 0 : i32
    return %c0_i32, %c0_i32_0, %arg0 : i32, i32, i32
  }
}

</mosaic_0001>

<bundles_post_ra>
// kernel: tpu_custom_call.1
= control target key start
LH: loop header
LB: loop body
LE: loop exit
PB: predicated region body
PF: predicated region fallthrough
CT: control target
= control target key end

     0   :  { %7 = vsyncpa [#allocation3], 0  ;;  %s1326_s0 = inlined_call_operand.hbm [shape: f32[3,8,256], index: 0, kind: input, shape index: {}]   ;;  %s1327_s1 = inlined_call_operand.hbm [shape: f32[8,8], index: 1, kind: input, shape index: {}]   ;;  %s1328_s2 = inlined_call_operand.hbm [shape: f32[8,8,256], index: 2, kind: output, shape index: {}]  }
   0x1   :  { %9 = vsyncpa [#allocation3 + $0x1], 0 }
   0x2   :  { %10 = vsyncpa [#allocation6], 0 }
   0x3   :  { %11 = vsyncpa [#allocation4], 0 }
   0x4   :  { %13 = vsyncpa [#allocation4 + $0x1], 0  ;;  %s992_s9 = smov 0   ;;  %s994_s10 = smov 0  }
   0x5   :  { %s996_s11 = smov 0   ;;  %s998_s12 = smov 0  }
   0x6 LB: > { %s1013_s13 = sadd.s32 4294967295, %s965_s12   ;;  %s738_s14 = sadd.s32 4294967294, %s965_s12   ;;  %s965_s12 = sphi %s998_s12, %s1353_s12   ;;  %s961_s11 = sphi %s996_s11, %s1352_s11   ;;  %s957_s10 = sphi %s994_s10, %s1351_s10   ;;  %s953_s9 = sphi %s992_s9, %s1350_s9  }
   0x7   : > { %s1017_s15 = sadd.s32 1, %s965_s12   ;;  %s26_s16 = sadd.s32 1, %s961_s11 }
   0x8   : > { %s23_s17 = ssub.s32 %s965_s12, %s1017_s15  ;;  %p33_p0 = scmp.ne.s32.totalorder %s961_s11, %s957_s10 }
   0x9   : > { %p24_p1 = scmp.eq.s32.totalorder %s23_s17, 0  ;;  %p34_p2 = scmp.eq.s32.totalorder %s965_s12, 0 }
   0xa   : > { %p39_p3 = scmp.ne.s32.totalorder %s957_s10, %s953_s9  ;;  %p1329_p4 = scmp.eq.s32.totalorder %s1013_s13, 0 }
   0xb   : > { %s1029_s18 = scalar_select %p24_p1, %s961_s11, %s26_s16  }
   0xc   : > { %p1031_p5 = por %p34_p2, %p33_p0  ;;  %p1037_p6 = por %p1329_p4, %p39_p3 }
   0xd   : > { %p84_p7 = scmp.eq.s32.totalorder %s1013_s13, 1  ;;  %p90_p8 = scmp.eq.s32.totalorder %s738_s14, 1 }
   0xe   : > { %s1335_s20 = scalar_select %p1037_p6, 1, 0 }
   0xf   : > { %p739_p9 = scmp.ge.s32.totalorder %s965_s12, 1  ;;  %p97_p10 = scmp.lt.s32.totalorder %s965_s12, 3 }
  0x10   : > { %p1044_p11 = por %p84_p7, %p33_p0  ;;  %p1048_p12 = por %p90_p8, %p39_p3 }
  0x11   : > { %p1052_p13 = pnand %p739_p9, %p97_p10  ;;  %s967_s24 = smov [#allocation5]  }
  0x12   : > { %s1336_s21 = scalar_select %p1044_p11, 1, 0 }
  0x13   : > { %s1337_s22 = scalar_select %p1048_p12, 1, 0 }
  0x14   : > { %s1338_s23 = scalar_select %p1052_p13, 1, 0 }
  0x15   : > { %p762_p2 = pneg %p1052_p13  ;;  %s110_s25 = sshll.u32 %s967_s24, 4  ;;  %s111_s25 = int_to_ptr.vmem [resolvable:$true] %s110_s25 }
  0x16   : > { %p775_p4 = scmp.lt.s32.totalorder %s965_s12, 2  ;;  %p1339_p0 = scmp.eq.s32.totalorder %s1013_s13, 0 }
  0x17   : > { %s121_s27 = sand.u32 1, %s961_s11   ;;  %s837_s4 = scalar_lea.hbm %s1327_s1, 128 }
  0x18   : > { %p1062_p7 = pnand %p762_p2, %p1339_p0  ;;  %p1069_p3 = pnand %p775_p4, %p1031_p5 }
  0x19   : > { %s752_s29 = smul.u32 24, %s121_s27  ;;  %p838_p8 = scmp.ne.s32.totalorder %s1327_s1, %s837_s4 }
  0x1a   : > { %s1341_s28 = scalar_select %p1069_p3, 1, 0 }
  0x1b   : > { %p839_p9 = pneg %p1062_p7  ;;  %p844_p4 = scmp.lt.u32.totalorder %s837_s4, %s1327_s1 }
  0x1d   : > { %p840_p10 = pnand %p839_p9, %p838_p8 }
  0x1f   : > { %p841_p2 = pneg %p840_p10 }
  0x21   : > { %p846_p5 = pnand %p844_p4, %p841_p2 }
  0x23   : > { %849 = shalt.err (!%p846_p5)
}
  0x24   : > { %s850_s14 = scalar_lea.vmem %s111_s25, 128  ;;  %p858_p11 = scmp.lt.s32.totalorder %s111_s25, %s111_s25 }
  0x25   : > { %p851_p0 = scmp.ne.s32.totalorder %s111_s25, %s850_s14  ;;  %p859_p6 = scmp.lt.s32.totalorder %s850_s14, %s850_s14 }
  0x27   : > { %p853_p1 = pnand %p851_p0, %p839_p9  ;;  %p860_p13 = por %p859_p6, %p858_p11 }
  0x29   : > { %p854_p12 = pneg %p853_p1 }
  0x2b   : > { %p861_p3 = pnand %p860_p13, %p854_p12 }
  0x2d   : > { %864 = shalt.err (!%p861_p3)
}
  0x2e   : > { %765 = dma.hbm_to_vmem [thread:$0]  (!%p1062_p7), %s1327_s1, 128, %s111_s25, [#allocation6]  }
  0x2f   : > { %s742_s19 = sshll.u32 %s965_s12, 7  ;;  %s125_s24 = scalar_lea.vmem [#allocation2], %s752_s29 }
  0x30   : > { %s131_s30 = sshll.u32 %s125_s24, 4  ;;  %s1093_s5 = scalar_lea.hbm %s1326_s0, %s742_s19  ;;  %s1095_s30 = int_to_ptr.vmem [resolvable:$true] %s131_s30 }
  0x31   : > { %s1097_s26 = scalar_lea.sflag [#allocation3], %s121_s27  ;;  %s865_s6 = scalar_lea.hbm %s1093_s5, 384 }
  0x32   : > { %p866_p6 = scmp.ne.s32.totalorder %s1093_s5, %s865_s6  ;;  %p1342_p11 = scmp.ne.s32.totalorder %s1341_s28, 0 }
  0x33   : > { %s870_s7 = scalar_lea.hbm %s1326_s0, 768  ;;  %p871_p7 = scmp.lt.u32.totalorder %s1093_s5, %s1326_s0 }
  0x34   : > { %p867_p12 = pneg %p1342_p11  ;;  %p872_p3 = scmp.lt.u32.totalorder %s870_s7, %s865_s6 }
  0x35   : > { %p874_p9 = scmp.lt.u32.totalorder %s865_s6, %s1093_s5 }
  0x36   : > { %p868_p13 = pnand %p867_p12, %p866_p6  ;;  %p873_p8 = por %p872_p3, %p871_p7 }
  0x38   : > { %p869_p1 = pneg %p868_p13  ;;  %p875_p10 = por %p874_p9, %p873_p8 }
  0x3a   : > { %p876_p2 = pnand %p875_p10, %p869_p1 }
  0x3c   : > { %879 = shalt.err (!%p876_p2)
}
  0x3d   : > { %s880_s27 = scalar_lea.vmem %s1095_s30, 384  ;;  %s968_s16 = smov [#allocation2]  }
  0x3e   : > { %p881_p4 = scmp.ne.s32.totalorder %s1095_s30, %s880_s27  ;;  %s885_s17 = sshll.u32 %s968_s16, 4  ;;  %s886_s17 = int_to_ptr.vmem [resolvable:$false] %s885_s17 }
  0x3f   : > { %s887_s19 = scalar_lea.vmem %s886_s17, 768  ;;  %p888_p6 = scmp.lt.s32.totalorder %s1095_s30, %s886_s17 }
  0x40   : > { %p883_p5 = pnand %p881_p4, %p867_p12  ;;  %p889_p13 = scmp.lt.s32.totalorder %s887_s19, %s880_s27 }
  0x42   : > { %p884_p0 = pneg %p883_p5  ;;  %p890_p7 = por %p889_p13, %p888_p6 }
  0x44   : > { %p891_p3 = pnand %p890_p7, %p884_p0 }
  0x46   : > { %894 = shalt.err (!%p891_p3)
}
  0x47   : > { %s969_s24 = smov 256   ;;  %s970_s3 = smov 128  }
  0x48   : > { %s971_s4 = smov 8   ;;  %p1343_p12 = scmp.ne.s32.totalorder %s1338_s23, 0 }
  0x49   : > { %769 = dma.hbm_to_vmem [thread:$0]  (!%p1342_p11), %s1093_s5, 384, %s1095_s30, %s1097_s26, %s969_s24, %s970_s3, %s971_s4  }
  0x4a   : > { %143 = sbr.rel (%p1343_p12) target bundleno = 254 (0xfe), region = 28  ;;  %s1128_s6 = sand.u32 (!%p1343_p12), 1, %s957_s10  }
  0x4b   : > { %s753_s25 = smul.u32 (!%p1343_p12), 24, %s1128_s6  ;;  %s146_s29 = scalar_lea.sflag (!%p1343_p12), [#allocation3], %s1128_s6 }
  0x4c   : > { %p1344_p1 = scmp.ne.s32.totalorder (!%p1343_p12), %s1335_s20, 0 }
  0x4d   : > { %s149_s7 = scalar_lea.vmem (!%p1343_p12), [#allocation2], %s753_s25 }
  0x51   : > { %940 = dma.done.wait (%p1344_p1), %s146_s29, 384  }
  0x52   : > { %942 = vsyncadd (%p1344_p1), %s146_s29, 4294966912  ;;  %p1345_p8 = scmp.eq.s32.totalorder %s1013_s13, 0 }
  0x54   : > { %944 = dma.done.wait (%p1345_p8), [#allocation6], 128   ;;  %p1346_p11 = pmov %p1345_p8 }
  0x55   : > { %v180_v0 = vlaneseq  ;;  %v972_v1 = vmov 1966171168   ;;  %v513_v13 = vld [vmem:[#allocation5] sm:$0xff]  ;;  %v1144_v15 = vld [vmem:[%s149_s7] sm:$0xff]  ;;  %v1146_v16 = vld [vmem:[%s149_s7 + $0x8] sm:$0xff]  ;;  %s745_s20 = sshll.u32 %s1128_s6, 6 }
  0x56   : > { %946 = vsyncadd (%p1346_p11), [#allocation6], 4294967168  ;;  %v178_v2 = vunpack.c.l.s4 %v972_v1  ;;  %v1149_v20 = vld [vmem:[%s149_s7 + $0x10] sm:$0xff]  ;;  %v176_v29 = vcombine.high %v1144_v15, %v1144_v15  ;;  %v284_v30 = vcombine.high %v1146_v16, %v1146_v16  ;;  %s1250_s23 = scalar_lea.vmem [#allocation7], %s745_s20  ;;  %s749_s28 = sshll.u32 %s1013_s13, 7 }
  0x57   : > { %v181_v3 = vshrl.u32 %v180_v0, 7  ;;  %v400_v31 = vcombine.high %v1149_v20, %v1149_v20  ;;  %s655_s30 = sshll.u32 %s1250_s23, 4  ;;  %s1272_s26 = scalar_lea.hbm %s1328_s2, %s749_s28  ;;  %s1278_s30 = int_to_ptr.vmem [resolvable:$true] %s655_s30 }
  0x58   : > { %v179_v4 = vunpack.c.0.s8 %v178_v2  ;;  %s643_s8 = scalar_lea.sflag [#allocation4], %s1128_s6  ;;  %s895_s14 = scalar_lea.vmem %s1278_s30, 1024 }
  0x59   : > { %v1140_v5 = vsub.s32 0, %v181_v3  ;;  %v530_v6 = vsub.s32 2, %v181_v3  ;;  %v537_v7 = vsub.s32 3, %v181_v3  ;;  %v523_v8 = vsub.s32 1, %v181_v3  ;;  %p896_p9 = scmp.ne.s32.totalorder %s1278_s30, %s895_s14  ;;  %p1347_p10 = scmp.ne.s32.totalorder %s1336_s21, 0 }
  0x5a   : > { %v551_v9 = vsub.s32 5, %v181_v3  ;;  %v544_v10 = vsub.s32 4, %v181_v3  ;;  %v565_v11 = vsub.s32 7, %v181_v3  ;;  %v1142_v12 = vsub.s32 %v179_v4, %v181_v3  ;;  %s973_s27 = smov [#allocation7]  }
  0x5b   : > { %v558_v14 = vsub.s32 6, %v181_v3  ;;  %v531_v17 = vrot.slane %v513_v13, %v530_v6  ;;  %v517_v18 = vrot.slane %v513_v13, %v1140_v5  ;;  %v538_v19 = vrot.slane %v513_v13, %v537_v7  ;;  %p897_p2 = pnand %p896_p9, %p1347_p10  ;;  %s899_s16 = sshll.u32 %s973_s27, 4  ;;  %s900_s16 = int_to_ptr.vmem [resolvable:$false] %s899_s16 }
  0x5c   : > { %v524_v21 = vrot.slane %v513_v13, %v523_v8  ;;  %v552_v22 = vrot.slane %v513_v13, %v551_v9  ;;  %v545_v23 = vrot.slane %v513_v13, %v544_v10  ;;  %v566_v24 = vrot.slane %v513_v13, %v565_v11  ;;  %s901_s17 = scalar_lea.vmem %s900_s16, 2048  ;;  %p902_p5 = scmp.lt.s32.totalorder %s1278_s30, %s900_s16 }
  0x5d   : > { %533 = vbcast.lane.b32.xlu1 %v531_v17, 256  ;;  %519 = vbcast.lane.b32.xlu0 %v517_v18, 256  ;;  %v183_v25 = vrot.slane %v1144_v15, %v1142_v12  ;;  %v291_v26 = vrot.slane %v1146_v16, %v1142_v12  ;;  %v407_v27 = vrot.slane %v1149_v20, %v1142_v12  ;;  %p898_p4 = pneg %p897_p2  ;;  %p903_p0 = scmp.lt.s32.totalorder %s901_s17, %s895_s14 }
  0x5e   : > { %v559_v28 = vrot.slane %v513_v13, %v558_v14  ;;  %v190_v38 = vrot.slane %v176_v29, %v1142_v12  ;;  %v1168_v39 = vrot.slane %v284_v30, %v1142_v12  ;;  %v414_v29 = vrot.slane %v400_v31, %v1142_v12 }
  0x5f   : > { %v199_v32 = vrot.slane %v183_v25, %v1142_v12  ;;  %v307_v33 = vrot.slane %v291_v26, %v1142_v12  ;;  %v423_v34 = vrot.slane %v407_v27, %v1142_v12  ;;  %v191_v35 = vcombine.high %v183_v25, %v183_v25  ;;  %p904_p6 = por %p903_p0, %p902_p5 }
  0x60   : > { %v299_v36 = vcombine.high %v291_v26, %v291_v26  ;;  %v415_v37 = vcombine.high %v407_v27, %v407_v27  ;;  %v300_v25 = vcombine.high %v1168_v39, %v1168_v39 }
  0x61   : > { %540 = vbcast.lane.b32.xlu1 %v538_v19, 256  ;;  %526 = vbcast.lane.b32.xlu0 %v524_v21, 256  ;;  %v221_v40 = vcombine.high %v199_v32, %v199_v32  ;;  %v329_v41 = vcombine.high %v307_v33, %v307_v33  ;;  %v445_v42 = vcombine.high %v423_v34, %v423_v34  ;;  %p905_p13 = pnand %p904_p6, %p898_p4 }
  0x62   : > { %v228_v43 = vrot.slane %v199_v32, %v1140_v5  ;;  %v336_v44 = vrot.slane %v307_v33, %v1140_v5  ;;  %v452_v45 = vrot.slane %v423_v34, %v1140_v5  ;;  %v213_v46 = vrot.slane %v191_v35, %v1142_v12 }
  0x63   : > { %v236_v47 = vrot.slane %v221_v40, %v1140_v5  ;;  %v344_v48 = vrot.slane %v329_v41, %v1140_v5  ;;  %v460_v49 = vrot.slane %v445_v42, %v1140_v5  ;;  %v321_v50 = vrot.slane %v299_v36, %v1142_v12 }
  0x64   : > { %v265_v51 = vsub.f32 %v228_v43, %v1144_v15  ;;  %v373_v52 = vsub.f32 %v336_v44, %v1146_v16  ;;  %v489_v53 = vsub.f32 %v452_v45, %v1149_v20  ;;  %v223_v54 = vcombine.high %v213_v46, %v213_v46 }
  0x65   : > { %554 = vbcast.lane.b32.xlu1 %v552_v22, 256  ;;  %547 = vbcast.lane.b32.xlu0 %v545_v23, 256  ;;  %v267_v55 = vsub.f32 %v236_v47, %v1144_v15  ;;  %v375_v56 = vsub.f32 %v344_v48, %v1146_v16  ;;  %v491_v57 = vsub.f32 %v460_v49, %v1149_v20 }
  0x66   : > { %v273_v58 = vmul.f32 %v265_v51, %v265_v51  ;;  %v381_v59 = vmul.f32 %v373_v52, %v373_v52  ;;  %v497_v60 = vmul.f32 %v489_v53, %v489_v53  ;;  %v240_v61 = vrot.slane %v223_v54, %v1140_v5 }
  0x67   : > { %v275_v62 = vmul.f32 %v267_v55, %v267_v55  ;;  %v383_v63 = vmul.f32 %v375_v56, %v375_v56  ;;  %v499_v0 = vmul.f32 %v491_v57, %v491_v57  ;;  %v331_v1 = vcombine.high %v321_v50, %v321_v50 }
  0x68   : > { %v389_v2 = vadd.f32 %v381_v59, %v273_v58  ;;  %v268_v3 = vsub.f32 %v240_v61, %v1144_v15  ;;  %v437_v4 = vrot.slane %v415_v37, %v1142_v12  ;;  %v232_v6 = vrot.slane %v213_v46, %v1140_v5 }
  0x69   : > { %568 = vbcast.lane.b32.xlu1 %v566_v24, 256  ;;  %561 = vbcast.lane.b32.xlu0 %v559_v28, 256  ;;  %v391_v7 = vadd.f32 %v383_v63, %v275_v62  ;;  %v348_v8 = vrot.slane %v331_v1, %v1140_v5  ;;  %v340_v9 = vrot.slane %v321_v50, %v1140_v5 }
  0x6a   : > { %v1190_v10 = vadd.f32 %v497_v60, %v389_v2  ;;  %v276_v11 = vmul.f32 %v268_v3, %v268_v3  ;;  %v447_v13 = vcombine.high %v437_v4, %v437_v4  ;;  %v266_v14 = vsub.f32 %v232_v6, %v1144_v15 }
  0x6b   : > { %v1193_v17 = vadd.f32 %v499_v0, %v391_v7  ;;  %v376_v18 = vsub.f32 %v348_v8, %v1146_v16  ;;  %v374_v19 = vsub.f32 %v340_v9, %v1146_v16  ;;  %v456_v21 = vrot.slane %v437_v4, %v1140_v5 }
  0x6c   : > { %v464_v22 = vrot.slane %v447_v13, %v1140_v5  ;;  %v274_v23 = vmul.f32 %v266_v14, %v266_v14  ;;  %v192_v24 = vcombine.high %v190_v38, %v190_v38  ;;  %v328_v33 = vrot.slane %v300_v25, %v1142_v12 }
  0x6d   : > { %v384_v26 = vmul.f32 %v376_v18, %v376_v18  ;;  %v382_v27 = vmul.f32 %v374_v19, %v374_v19  ;;  %v490_v28 = vsub.f32 %v456_v21, %v1149_v20  ;;  %v206_v34 = vrot.slane %v190_v38, %v1142_v12 }
  0x6e   : > { %v492_v30 = vsub.f32 %v464_v22, %v1149_v20  ;;  %v220_v32 = vrot.slane %v192_v24, %v1142_v12  ;;  %v416_v40 = vcombine.high %v414_v29, %v414_v29  ;;  %v356_v43 = vrot.slane %v328_v33, %v1140_v5 }
  0x6f   : > { %v392_v35 = vadd.f32 %v384_v26, %v276_v11  ;;  %v390_v36 = vadd.f32 %v382_v27, %v274_v23  ;;  %v498_v37 = vmul.f32 %v490_v28, %v490_v28  ;;  %v244_v44 = vrot.slane %v206_v34, %v1140_v5 }
  0x70   : > { %v500_v41 = vmul.f32 %v492_v30, %v492_v30  ;;  %v248_v42 = vrot.slane %v220_v32, %v1140_v5  ;;  %v444_v45 = vrot.slane %v416_v40, %v1142_v12  ;;  %v314_v46 = vrot.slane %v1168_v39, %v1142_v12 }
  0x71   : > { %v506_v31 = vadd.f32 %v498_v37, %v390_v36  ;;  %v430_v47 = vrot.slane %v414_v29, %v1142_v12  ;;  %v378_v49 = vsub.f32 %v356_v43, %v1146_v16  ;;  %v269_v50 = vsub.f32 %v244_v44, %v1144_v15 }
  0x72   : > { %v508_v38 = vadd.f32 %v500_v41, %v392_v35  ;;  %v270_v48 = vsub.f32 %v248_v42, %v1144_v15  ;;  %v472_v51 = vrot.slane %v444_v45, %v1140_v5  ;;  %v352_v52 = vrot.slane %v314_v46, %v1140_v5 }
  0x73   : > { %v468_v53 = vrot.slane %v430_v47, %v1140_v5  ;;  %v224_v54 = vcombine.high %v220_v32, %v220_v32  ;;  %v386_v56 = vmul.f32 %v378_v49, %v378_v49  ;;  %v277_v57 = vmul.f32 %v269_v50, %v269_v50 }
  0x74   : > { %v278_v55 = vmul.f32 %v270_v48, %v270_v48  ;;  %v332_v39 = vcombine.high %v328_v33, %v328_v33  ;;  %v494_v12 = vsub.f32 %v472_v51, %v1149_v20  ;;  %v377_v58 = vsub.f32 %v352_v52, %v1146_v16 }
  0x75   : > { %v493_v59 = vsub.f32 %v468_v53, %v1149_v20  ;;  %v256_v60 = vrot.slane %v224_v54, %v1140_v5  ;;  %v448_v63 = vcombine.high %v444_v45, %v444_v45  ;;  %v222_v0 = vcombine.high %v206_v34, %v206_v34 }
  0x76   : > { %v394_v61 = vadd.f32 %v386_v56, %v278_v55  ;;  %v364_v62 = vrot.slane %v332_v39, %v1140_v5  ;;  %v502_v1 = vmul.f32 %v494_v12, %v494_v12  ;;  %v385_v2 = vmul.f32 %v377_v58, %v377_v58 }
  0x77   : > { %v501_v3 = vmul.f32 %v493_v59, %v493_v59  ;;  %v272_v4 = vsub.f32 %v256_v60, %v1144_v15  ;;  %v480_v7 = vrot.slane %v448_v63, %v1140_v5  ;;  %v252_v8 = vrot.slane %v222_v0, %v1140_v5 }
  0x78   : > { %v380_v6 = vsub.f32 %v364_v62, %v1146_v16  ;;  %v330_v9 = vcombine.high %v314_v46, %v314_v46  ;;  %v510_v11 = vadd.f32 %v502_v1, %v394_v61  ;;  %v393_v13 = vadd.f32 %v385_v2, %v277_v57 }
  0x79   : > { %v280_v14 = vmul.f32 %v272_v4, %v272_v4  ;;  %v446_v18 = vcombine.high %v430_v47, %v430_v47  ;;  %v496_v21 = vsub.f32 %v480_v7, %v1149_v20  ;;  %v271_v22 = vsub.f32 %v252_v8, %v1144_v15 }
  0x7a   : > { %v388_v19 = vmul.f32 %v380_v6, %v380_v6  ;;  %v360_v23 = vrot.slane %v330_v9, %v1140_v5  ;;  %v509_v24 = vadd.f32 %v501_v3, %v393_v13 }
  0x7b   : > { %v476_v25 = vrot.slane %v446_v18, %v1140_v5  ;;  %v504_v27 = vmul.f32 %v496_v21, %v496_v21  ;;  %v279_v28 = vmul.f32 %v271_v22, %v271_v22 }
  0x7c   : > { %v396_v26 = vadd.f32 %v388_v19, %v280_v14  ;;  %v379_v29 = vsub.f32 %v360_v23, %v1146_v16 }
  0x7d   : > { %v495_v30 = vsub.f32 %v476_v25, %v1149_v20 }
  0x7e   : > { %v512_v32 = vadd.f32 %v504_v27, %v396_v26  ;;  %v387_v33 = vmul.f32 %v379_v29, %v379_v29 }
  0x7f   : > { %v503_v34 = vmul.f32 %v495_v30, %v495_v30 }
  0x80   : > { %v395_v35 = vadd.f32 %v387_v33, %v279_v28 }
  0x82   : > { %v511_v36 = vadd.f32 %v503_v34, %v395_v35 }
  0xcf   : > { %v534_v37 = vpop.permute.xlu1 %533  ;;  %v520_v40 = vpop.permute.xlu0 %519 }
  0xd0   : > { %v572_v15 = vadd.f32 %v534_v37, %v1193_v17  ;;  %v570_v41 = vadd.f32 %v520_v40, %v1190_v10 }
  0xd2   : > { %821 = vrsqrt.f32 %v572_v15  ;;  %vm594_vm0 = vcmp.eq.f32.partialorder %v572_v15, inf  ;;  %vm596_vm1 = vcmp.eq.f32.partialorder %v572_v15, 0.0  ;;  %v597_v50 = vand.u32 2147483648, %v572_v15 }
  0xd3   : > { %823 = vrsqrt.f32 %v570_v41  ;;  %v541_v5 = vpop.permute.xlu1 %540  ;;  %v527_v42 = vpop.permute.xlu0 %526  ;;  %vm580_vm2 = vcmp.eq.f32.partialorder %v570_v41, inf  ;;  %v583_v53 = vand.u32 2147483648, %v570_v41  ;;  %vm582_vm3 = vcmp.eq.f32.partialorder %v570_v41, 0.0 }
  0xd4   : > { %v573_v43 = vadd.f32 %v541_v5, %v508_v38  ;;  %v571_v16 = vadd.f32 %v527_v42, %v506_v31 }
  0xd6   : > { %825 = vrsqrt.f32 %v573_v43  ;;  %vm601_vm4 = vcmp.eq.f32.partialorder %v573_v43, inf  ;;  %v604_v58 = vand.u32 2147483648, %v573_v43  ;;  %vm603_vm5 = vcmp.eq.f32.partialorder %v573_v43, 0.0 }
  0xd7   : > { %827 = vrsqrt.f32 %v571_v16  ;;  %v555_v20 = vpop.permute.xlu1 %554  ;;  %v548_v44 = vpop.permute.xlu0 %547  ;;  %vm587_vm6 = vcmp.eq.f32.partialorder %v571_v16, inf  ;;  %v590_v61 = vand.u32 2147483648, %v571_v16  ;;  %vm589_vm7 = vcmp.eq.f32.partialorder %v571_v16, 0.0 }
  0xd8   : > { %v575_v45 = vadd.f32 %v555_v20, %v510_v11  ;;  %v1240_v46 = vadd.f32 %v548_v44, %v509_v24 }
  0xda   : > { %829 = vrsqrt.f32 %v575_v45  ;;  %vm615_vm8 = vcmp.eq.f32.partialorder %v575_v45, inf  ;;  %v618_v4 = vand.u32 2147483648, %v575_v45  ;;  %vm617_vm9 = vcmp.eq.f32.partialorder %v575_v45, 0.0 }
  0xdb   : > { %831 = vrsqrt.f32 %v1240_v46  ;;  %v569_v17 = vpop.permute.xlu1 %568  ;;  %v562_v47 = vpop.permute.xlu0 %561  ;;  %vm608_vm10 = vcmp.eq.f32.partialorder %v1240_v46, inf  ;;  %v611_v8 = vand.u32 2147483648, %v1240_v46  ;;  %vm610_vm11 = vcmp.eq.f32.partialorder %v1240_v46, 0.0 }
  0xdc   : > { %v822_v10 = vpop.eup %821  ;;  %v1244_v48 = vadd.f32 %v569_v17, %v512_v32  ;;  %v1246_v49 = vadd.f32 %v562_v47, %v511_v36 }
  0xdd   : > { %v824_v38 = vpop.eup %823  ;;  %v593_v31 = vmul.f32 %v822_v10, %v572_v15 }
  0xde   : > { %v579_v51 = vmul.f32 %v824_v38, %v570_v41  ;;  %833 = vrsqrt.f32 %v1244_v48  ;;  %vm629_vm12 = vcmp.eq.f32.partialorder %v1244_v48, inf  ;;  %v632_v21 = vand.u32 2147483648, %v1244_v48 }
  0xdf   : > { %v595_v52 = vsel %vm594_vm0, %v572_v15, %v593_v31  ;;  %835 = vrsqrt.f32 %v1246_v49  ;;  %vm631_vm13 = vcmp.eq.f32.partialorder %v1244_v48, 0.0  ;;  %vm622_vm14 = vcmp.eq.f32.partialorder %v1246_v49, inf }
  0xe0   : > { %v826_v54 = vpop.eup %825  ;;  %v598_v55 = vsel %vm596_vm1, %v597_v50, %v595_v52  ;;  %v581_v56 = vsel %vm580_vm2, %v570_v41, %v579_v51  ;;  %v625_v24 = vand.u32 2147483648, %v1246_v49  ;;  %vm624_vm15 = vcmp.eq.f32.partialorder %v1246_v49, 0.0 }
  0xe1   : > { %v828_v57 = vpop.eup %827  ;;  %636 = vst [vmem:[%s1250_s23 + $0x10] sm:$0xff] %v598_v55  ;;  %v584_v39 = vsel %vm582_vm3, %v583_v53, %v581_v56  ;;  %v600_v12 = vmul.f32 %v826_v54, %v573_v43 }
  0xe2   : > { %634 = vst [vmem:[%s1250_s23] sm:$0xff] %v584_v39  ;;  %v586_v59 = vmul.f32 %v828_v57, %v571_v16 }
  0xe3   : > { %v602_v60 = vsel %vm601_vm4, %v573_v43, %v600_v12 }
  0xe4   : > { %v830_v62 = vpop.eup %829  ;;  %v605_v63 = vsel %vm603_vm5, %v604_v58, %v602_v60  ;;  %v588_v0 = vsel %vm587_vm6, %v571_v16, %v586_v59 }
  0xe5   : > { %v832_v1 = vpop.eup %831  ;;  %637 = vst [vmem:[%s1250_s23 + $0x18] sm:$0xff] %v605_v63  ;;  %v591_v2 = vsel %vm589_vm7, %v590_v61, %v588_v0  ;;  %v614_v3 = vmul.f32 %v830_v62, %v575_v45 }
  0xe6   : > { %635 = vst [vmem:[%s1250_s23 + $0x8] sm:$0xff] %v591_v2  ;;  %v607_v6 = vmul.f32 %v832_v1, %v1240_v46 }
  0xe7   : > { %v616_v7 = vsel %vm615_vm8, %v575_v45, %v614_v3 }
  0xe8   : > { %v834_v9 = vpop.eup %833  ;;  %v619_v11 = vsel %vm617_vm9, %v618_v4, %v616_v7  ;;  %v609_v13 = vsel %vm608_vm10, %v1240_v46, %v607_v6 }
  0xe9   : > { %v836_v14 = vpop.eup %835  ;;  %639 = vst [vmem:[%s1250_s23 + $0x28] sm:$0xff] %v619_v11  ;;  %v612_v18 = vsel %vm610_vm11, %v611_v8, %v609_v13  ;;  %v628_v19 = vmul.f32 %v834_v9, %v1244_v48 }
  0xea   : > { %638 = vst [vmem:[%s1250_s23 + $0x20] sm:$0xff] %v612_v18  ;;  %v621_v22 = vmul.f32 %v836_v14, %v1246_v49 }
  0xeb   : > { %v630_v23 = vsel %vm629_vm12, %v1244_v48, %v628_v19 }
  0xec   : > { %v633_v25 = vsel %vm631_vm13, %v632_v21, %v630_v23  ;;  %v623_v26 = vsel %vm622_vm14, %v1246_v49, %v621_v22 }
  0xed   : > { %641 = vst [vmem:[%s1250_s23 + $0x38] sm:$0xff] %v633_v25  ;;  %v626_v27 = vsel %vm624_vm15, %v625_v24, %v623_v26 }
  0xee   : > { %640 = vst [vmem:[%s1250_s23 + $0x30] sm:$0xff] %v626_v27 }
  0xef   : > { %908 = shalt.err (!%p905_p13)
}
  0xf0   : > { %s909_s19 = scalar_lea.hbm %s1272_s26, 1024  ;;  %s913_s4 = scalar_lea.hbm %s1328_s2, 2048 }
  0xf1   : > { %p910_p7 = scmp.ne.s32.totalorder %s1272_s26, %s909_s19  ;;  %p914_p1 = scmp.lt.u32.totalorder %s1272_s26, %s1328_s2 }
  0xf2   : > { %p915_p8 = scmp.lt.u32.totalorder %s913_s4, %s909_s19  ;;  %p917_p9 = scmp.lt.u32.totalorder %s909_s19, %s1272_s26 }
  0xf3   : > { %p911_p3 = pnand %p910_p7, %p1347_p10 }
  0xf4   : > { %p916_p11 = por %p915_p8, %p914_p1 }
  0xf5   : > { %p912_p12 = pneg %p911_p3 }
  0xf6   : > { %p918_p2 = por %p917_p9, %p916_p11 }
  0xf8   : > { %p919_p4 = pnand %p918_p2, %p912_p12 }
  0xfa   : > { %922 = shalt.err (!%p919_p4)
}
  0xfb   : > { %s974_s7 = smov 128   ;;  %s975_s20 = smov 256  }
  0xfc   : > { %s976_s23 = smov 8  }
  0xfd   : > { %760 = dma.vmem_to_hbm [thread:$0]  (%p1347_p10), %s1278_s30, 1024, %s1272_s26, %s643_s8, %s974_s7, %s975_s20, %s976_s23  }
  0xfe PF: > { %s670_s28 = sand.u32 1, %s953_s9   ;;  %p1348_p5 = scmp.ne.s32.totalorder %s1337_s22, 0 }
  0xff   : > { %p1349_p0 = scmp.ge.s32.totalorder %s965_s12, 2  ;;  %s671_s13 = scalar_lea.sflag [#allocation4], %s670_s28 }
 0x101   : > { %p771_p6 = pnand %p1349_p0, %p1348_p5 }
 0x103   : > { %948 = dma.done.wait (!%p771_p6), %s671_s13, 1024  }
 0x104   : > { %950 = vsyncadd (!%p771_p6), %s671_s13, 4294966272  ;;  %p16_p13 = scmp.ge.s32.totalorder %s1017_s15, 4   ;;  %s1350_s9 = smov %s957_s10 }
 0x105   : > { %s1351_s10 = smov %s961_s11  ;;  %s1352_s11 = smov %s1029_s18 }
 0x106   : > { %s1353_s12 = smov %s1017_s15  ;;  %18 = sbr.rel (!%p16_p13) target bundleno = 6 (0x6), region = 79 }
 0x10d   :  { %676 = vsyncpa [#allocation3], 1 }
 0x10e   :  { %678 = vsyncpa [#allocation3 + $0x1], 1 }
 0x10f   :  { %679 = vsyncpa [#allocation6], 1 }
 0x110   :  { %680 = vsyncpa [#allocation4], 1 }
 0x111   :  { %682 = vsyncpa [#allocation4 + $0x1], 1 }

</bundles_post_ra>
